<compile_context>
chip_gen: v7x
topology: tpu7x:2x2x1
jax: 0.10.0
libtpu: 0.0.40
codegen_flags: <defaults>
</compile_context>

<pallas_src>
import jax
import jax.numpy as jnp
from jax import lax
from jax.experimental import pallas as pl
from jax.experimental.pallas import tpu as pltpu


# -----------------------------------------------------------------------------
# Kernel
# -----------------------------------------------------------------------------
def _make_lstm_kernel(nlayers: int, hidden: int, seq_len: int):
    """Builds a kernel closed over static nlayers / hidden / seq_len."""
    H = hidden

    def kernel(*refs):
        idx = 0
        g0x_ref = refs[idx]; idx += 1          # (SEQ, Bp, 4H)  precomputed x@Wih0^T + bias0
        h0_ref = refs[idx]; idx += 1           # (L, Bp, H)
        c0_ref = refs[idx]; idx += 1           # (L, Bp, H)
        whh0_ref = refs[idx]; idx += 1         # (H, 4H)
        if nlayers > 1:
            wih_ref = refs[idx]; idx += 1      # (L-1, H, 4H)
            whh_ref = refs[idx]; idx += 1      # (L-1, H, 4H)
            b_ref = refs[idx]; idx += 1        # (L-1, 1, 4H)   pre-summed b_ih + b_hh
        wd_ref = refs[idx]; idx += 1           # (H, D)
        bd_ref = refs[idx]; idx += 1           # (1, D)
        out_ref = refs[idx]                    # (Bp, D)

        def apply_gates(gates, c_prev):
            # Full-width transcendentals (one vreg each), then 32-lane slices.
            sig = jax.nn.sigmoid(gates)
            tnh = jnp.tanh(gates)
            i_g = sig[:, 0 * H:1 * H]
            f_g = sig[:, 1 * H:2 * H]
            g_g = tnh[:, 2 * H:3 * H]
            o_g = sig[:, 3 * H:4 * H]
            c_new = f_g * c_prev + i_g * g_g
            h_new = o_g * jnp.tanh(c_new)
            return h_new, c_new

        # Hoist all weight loads out of the time loop.
        whh0 = whh0_ref[...]
        if nlayers > 1:
            wih_rest = [wih_ref[l] for l in range(nlayers - 1)]
            whh_rest = [whh_ref[l] for l in range(nlayers - 1)]
            b_rest = [b_ref[l] for l in range(nlayers - 1)]

        def step(t, carry):
            hs = list(carry[:nlayers])
            cs = list(carry[nlayers:])

            # Layer 0: input projection + bias precomputed for all timesteps.
            g0 = g0x_ref[t] + jnp.dot(hs[0], whh0,
                                      preferred_element_type=jnp.float32)
            hs[0], cs[0] = apply_gates(g0, cs[0])
            inp = hs[0]

            # Stacked layers 1..L-1.  The two dots per layer are independent
            # (inp from this timestep, hs[l] from the previous one) and pipeline
            # on the MXU.
            for l in range(1, nlayers):
                g = (jnp.dot(inp, wih_rest[l - 1],
                             preferred_element_type=jnp.float32)
                     + jnp.dot(hs[l], whh_rest[l - 1],
                               preferred_element_type=jnp.float32)
                     + b_rest[l - 1])
                hs[l], cs[l] = apply_gates(g, cs[l])
                inp = hs[l]

            return tuple(hs) + tuple(cs)

        init = (tuple(h0_ref[l] for l in range(nlayers))
                + tuple(c0_ref[l] for l in range(nlayers)))
        final = lax.fori_loop(0, seq_len, step, init)

        h_top = final[nlayers - 1]             # last-timestep hidden of the top layer
        out_ref[...] = (jnp.dot(h_top, wd_ref[...],
                                preferred_element_type=jnp.float32)
                        + bd_ref[...])

    return kernel


# -----------------------------------------------------------------------------
# Wrapper
# -----------------------------------------------------------------------------
def midi_lstm_forward(params, pitch_seq, h0, c0):
    """params: dict produced by init_params.  pitch_seq: (SEQ, B) int32."""
    nlayers = params["nlayers"]
    hidden = params["hidden_dim"]
    d_out = params["d"]
    emb = params["embedding"]                      # (pitch_size, E)

    seq_len, batch = pitch_seq.shape

    # Pad batch to a full 8-sublane tile.
    b_pad = max(8, ((batch + 7) // 8) * 8)

    # Embedding lookup (gather) done as glue in plain JAX.
    x = jnp.take(emb, pitch_seq, axis=0)           # (SEQ, B, E)  time-major

    # Precompute layer-0 input projection (+ combined bias) for all timesteps:
    # one big MXU-friendly matmul instead of SEQ tiny latency-bound ones.
    wih0_t = params["w_ih_l0"].T                   # (E, 4H)
    bias0 = (params["b_ih_l0"] + params["b_hh_l0"]).reshape(1, 1, -1)
    g0x = jnp.einsum("sbe,eg->sbg", x, wih0_t,
                     precision=lax.Precision.HIGHEST) + bias0   # (SEQ, B, 4H)

    if b_pad != batch:
        pad_b = b_pad - batch
        g0x = jnp.pad(g0x, ((0, 0), (0, pad_b), (0, 0)))
        h0p = jnp.pad(h0, ((0, 0), (0, pad_b), (0, 0)))
        c0p = jnp.pad(c0, ((0, 0), (0, pad_b), (0, 0)))
    else:
        h0p, c0p = h0, c0

    whh0_t = params["w_hh_l0"].T                   # (H, 4H)
    wd_t = params["w_d"].T                         # (H, D)
    bd = params["b_d"].reshape(1, -1)              # (1, D)

    inputs = [g0x, h0p, c0p, whh0_t]
    if nlayers > 1:
        wih_rest = jnp.stack(
            [params[f"w_ih_l{l}"].T for l in range(1, nlayers)])   # (L-1, H, 4H)
        whh_rest = jnp.stack(
            [params[f"w_hh_l{l}"].T for l in range(1, nlayers)])   # (L-1, H, 4H)
        b_rest = jnp.stack(
            [(params[f"b_ih_l{l}"] + params[f"b_hh_l{l}"]).reshape(1, -1)
             for l in range(1, nlayers)])                          # (L-1, 1, 4H)
        inputs += [wih_rest, whh_rest, b_rest]
    inputs += [wd_t, bd]

    # Everything is resident in VMEM (full-array blocks, <0.5 MiB total);
    # the time recurrence runs inside a single grid step.
    in_specs = [
        pl.BlockSpec(a.shape, lambda i, n=a.ndim: (0,) * n) for a in inputs
    ]

    kernel = _make_lstm_kernel(nlayers, hidden, seq_len)

    out = pl.pallas_call(
        kernel,
        out_shape=jax.ShapeDtypeStruct((b_pad, d_out), jnp.float32),
        grid_spec=pltpu.PrefetchScalarGridSpec(
            num_scalar_prefetch=0,
            grid=(1,),
            in_specs=in_specs,
            out_specs=pl.BlockSpec((b_pad, d_out), lambda i: (0, 0)),
        ),
        compiler_params=pltpu.CompilerParams(
            dimension_semantics=("arbitrary",),
        ),
    )(*inputs)

    return out[:batch]


# -----------------------------------------------------------------------------
# Deterministic parameter init (shapes from MidiLstm.__init__)
# -----------------------------------------------------------------------------
def init_params(key, embedding_dim, hidden_dim, pitch_size, nlayers, d):
    params = {
        "embedding_dim": embedding_dim,
        "hidden_dim": hidden_dim,
        "pitch_size": pitch_size,
        "nlayers": nlayers,
        "d": d,
    }
    scale = 1.0 / jnp.sqrt(jnp.float32(hidden_dim))

    key, k = jax.random.split(key)
    params["embedding"] = jax.random.normal(k, (pitch_size, embedding_dim), jnp.float32)

    for l in range(nlayers):
        in_dim = embedding_dim if l == 0 else hidden_dim
        key, k1, k2, k3, k4 = jax.random.split(key, 5)
        params[f"w_ih_l{l}"] = jax.random.uniform(
            k1, (4 * hidden_dim, in_dim), jnp.float32, -scale, scale)
        params[f"w_hh_l{l}"] = jax.random.uniform(
            k2, (4 * hidden_dim, hidden_dim), jnp.float32, -scale, scale)
        params[f"b_ih_l{l}"] = jax.random.uniform(
            k3, (4 * hidden_dim,), jnp.float32, -scale, scale)
        params[f"b_hh_l{l}"] = jax.random.uniform(
            k4, (4 * hidden_dim,), jnp.float32, -scale, scale)

    key, k1, k2 = jax.random.split(key, 3)
    params["w_d"] = jax.random.uniform(k1, (d, hidden_dim), jnp.float32, -scale, scale)
    params["b_d"] = jax.random.uniform(k2, (d,), jnp.float32, -scale, scale)
    return params


# -----------------------------------------------------------------------------
# Pure-JAX reference (for a sanity check)
# -----------------------------------------------------------------------------
def reference_forward(params, pitch_seq, h0, c0):
    nlayers = params["nlayers"]
    hidden = params["hidden_dim"]
    x = jnp.take(params["embedding"], pitch_seq, axis=0)  # (SEQ, B, E)

    h = [h0[l] for l in range(nlayers)]
    c = [c0[l] for l in range(nlayers)]
    seq_len = x.shape[0]
    for t in range(seq_len):
        inp = x[t]
        for l in range(nlayers):
            gates = (inp @ params[f"w_ih_l{l}"].T + h[l] @ params[f"w_hh_l{l}"].T
                     + params[f"b_ih_l{l}"] + params[f"b_hh_l{l}"])
            i_g = jax.nn.sigmoid(gates[:, 0 * hidden:1 * hidden])
            f_g = jax.nn.sigmoid(gates[:, 1 * hidden:2 * hidden])
            g_g = jnp.tanh(gates[:, 2 * hidden:3 * hidden])
            o_g = jax.nn.sigmoid(gates[:, 3 * hidden:4 * hidden])
            c[l] = f_g * c[l] + i_g * g_g
            h[l] = o_g * jnp.tanh(c[l])
            inp = h[l]
    return h[-1] @ params["w_d"].T + params["b_d"]


# -----------------------------------------------------------------------------
if __name__ == "__main__":
    EMBED = 16
    HIDDEN = 32
    PITCH_SIZE = 48
    NLAYERS = 2
    D = 8
    BATCH = 4
    SEQ_LEN = 8   # original code hardcodes 100; parameterized here for a small test

    key = jax.random.PRNGKey(0)
    key, pk, sk = jax.random.split(key, 3)

    params = init_params(pk, EMBED, HIDDEN, PITCH_SIZE, NLAYERS, D)

    pitch_seq = jax.random.randint(sk, (SEQ_LEN, BATCH), 0, PITCH_SIZE, jnp.int32)
    h0 = jnp.zeros((NLAYERS, BATCH, HIDDEN), jnp.float32)   # init_hidden()
    c0 = jnp.zeros((NLAYERS, BATCH, HIDDEN), jnp.float32)

    out = midi_lstm_forward(params, pitch_seq, h0, c0)
    out = jax.block_until_ready(out)

    ref = reference_forward(params, pitch_seq, h0, c0)
    assert out.shape == (BATCH, D), out.shape
    assert jnp.allclose(out, ref, atol=1e-2, rtol=1e-2), (out, ref)

    print("KERNEL_OK")
</pallas_src>

<mosaic_0001>
module attributes {stable_mosaic.version = 11 : i64} {
  func.func @kernel(%arg0: i32, %arg1: memref<8x8x128xf32, #tpu.memory_space<vmem>>, %arg2: memref<2x8x32xf32, #tpu.memory_space<vmem>>, %arg3: memref<2x8x32xf32, #tpu.memory_space<vmem>>, %arg4: memref<32x128xf32, #tpu.memory_space<vmem>>, %arg5: memref<1x32x128xf32, #tpu.memory_space<vmem>>, %arg6: memref<1x32x128xf32, #tpu.memory_space<vmem>>, %arg7: memref<1x1x128xf32, #tpu.memory_space<vmem>>, %arg8: memref<32x8xf32, #tpu.memory_space<vmem>>, %arg9: memref<1x8xf32, #tpu.memory_space<vmem>>, %arg10: memref<8x8xf32, #tpu.memory_space<vmem>>) attributes {dimension_semantics = [#tpu.dimension_semantics<arbitrary>], iteration_bounds = array<i64: 1>, scalar_prefetch = 0 : i64, scratch_operands = 0 : i64, tpu.core_type = #tpu.core_type<tc>, window_params = [{pipeline_mode = #tpu.pipeline_mode<synchronous>, transform_indices = @transform_0, window_bounds = array<i64: 8, 8, 128>}, {pipeline_mode = #tpu.pipeline_mode<synchronous>, transform_indices = @transform_1, window_bounds = array<i64: 2, 8, 32>}, {pipeline_mode = #tpu.pipeline_mode<synchronous>, transform_indices = @transform_2, window_bounds = array<i64: 2, 8, 32>}, {pipeline_mode = #tpu.pipeline_mode<synchronous>, transform_indices = @transform_3, window_bounds = array<i64: 32, 128>}, {pipeline_mode = #tpu.pipeline_mode<synchronous>, transform_indices = @transform_4, window_bounds = array<i64: 1, 32, 128>}, {pipeline_mode = #tpu.pipeline_mode<synchronous>, transform_indices = @transform_5, window_bounds = array<i64: 1, 32, 128>}, {pipeline_mode = #tpu.pipeline_mode<synchronous>, transform_indices = @transform_6, window_bounds = array<i64: 1, 1, 128>}, {pipeline_mode = #tpu.pipeline_mode<synchronous>, transform_indices = @transform_7, window_bounds = array<i64: 32, 8>}, {pipeline_mode = #tpu.pipeline_mode<synchronous>, transform_indices = @transform_8, window_bounds = array<i64: 1, 8>}, {pipeline_mode = #tpu.pipeline_mode<synchronous>, transform_indices = @transform_9, window_bounds = array<i64: 8, 8>}]} {
    %c0 = arith.constant 0 : index
    %c0_0 = arith.constant 0 : index
    %0 = vector.load %arg4[%c0, %c0_0] : memref<32x128xf32, #tpu.memory_space<vmem>>, vector<32x128xf32>
    %c0_1 = arith.constant 0 : index
    %c0_2 = arith.constant 0 : index
    %c0_3 = arith.constant 0 : index
    %1 = vector.load %arg5[%c0_1, %c0_2, %c0_3] : memref<1x32x128xf32, #tpu.memory_space<vmem>>, vector<1x32x128xf32>
    %2 = vector.shape_cast %1 : vector<1x32x128xf32> to vector<32x128xf32>
    %c0_4 = arith.constant 0 : index
    %c0_5 = arith.constant 0 : index
    %c0_6 = arith.constant 0 : index
    %3 = vector.load %arg6[%c0_4, %c0_5, %c0_6] : memref<1x32x128xf32, #tpu.memory_space<vmem>>, vector<1x32x128xf32>
    %4 = vector.shape_cast %3 : vector<1x32x128xf32> to vector<32x128xf32>
    %c0_7 = arith.constant 0 : index
    %c0_8 = arith.constant 0 : index
    %c0_9 = arith.constant 0 : index
    %5 = vector.load %arg7[%c0_7, %c0_8, %c0_9] : memref<1x1x128xf32, #tpu.memory_space<vmem>>, vector<1x1x128xf32>
    %6 = vector.shape_cast %5 : vector<1x1x128xf32> to vector<1x128xf32>
    %c0_10 = arith.constant 0 : index
    %c0_11 = arith.constant 0 : index
    %c0_12 = arith.constant 0 : index
    %7 = vector.load %arg2[%c0_10, %c0_11, %c0_12] : memref<2x8x32xf32, #tpu.memory_space<vmem>>, vector<1x8x32xf32>
    %8 = vector.shape_cast %7 : vector<1x8x32xf32> to vector<8x32xf32>
    %c1 = arith.constant 1 : index
    %c0_13 = arith.constant 0 : index
    %c0_14 = arith.constant 0 : index
    %9 = vector.load %arg2[%c1, %c0_13, %c0_14] : memref<2x8x32xf32, #tpu.memory_space<vmem>>, vector<1x8x32xf32>
    %10 = vector.shape_cast %9 : vector<1x8x32xf32> to vector<8x32xf32>
    %c0_15 = arith.constant 0 : index
    %c0_16 = arith.constant 0 : index
    %c0_17 = arith.constant 0 : index
    %11 = vector.load %arg3[%c0_15, %c0_16, %c0_17] : memref<2x8x32xf32, #tpu.memory_space<vmem>>, vector<1x8x32xf32>
    %12 = vector.shape_cast %11 : vector<1x8x32xf32> to vector<8x32xf32>
    %c1_18 = arith.constant 1 : index
    %c0_19 = arith.constant 0 : index
    %c0_20 = arith.constant 0 : index
    %13 = vector.load %arg3[%c1_18, %c0_19, %c0_20] : memref<2x8x32xf32, #tpu.memory_space<vmem>>, vector<1x8x32xf32>
    %14 = vector.shape_cast %13 : vector<1x8x32xf32> to vector<8x32xf32>
    %c0_i32 = arith.constant 0 : i32
    %c8_i32 = arith.constant 8 : i32
    %15 = arith.addi %c0_i32, %c8_i32 : i32
    %c1_i32 = arith.constant 1 : i32
    %16:4 = scf.for %arg11 = %c0_i32 to %15 step %c1_i32 iter_args(%arg12 = %8, %arg13 = %10, %arg14 = %12, %arg15 = %14) -> (vector<8x32xf32>, vector<8x32xf32>, vector<8x32xf32>, vector<8x32xf32>)  : i32 {
      %23 = arith.index_cast %arg11 : i32 to index
      %c0_28 = arith.constant 0 : index
      %c0_29 = arith.constant 0 : index
      %24 = vector.load %arg1[%23, %c0_28, %c0_29] : memref<8x8x128xf32, #tpu.memory_space<vmem>>, vector<1x8x128xf32>
      %25 = vector.shape_cast %24 : vector<1x8x128xf32> to vector<8x128xf32>
      %cst_30 = arith.constant dense<0.000000e+00> : vector<8x128xf32>
      %26 = tpu.matmul %arg12, %0, %cst_30 {dimension_numbers = #tpu.dot_dimension_numbers<[1], [0], [0], [1], [0, 0, 1, 1], [], []>} : vector<8x32xf32>, vector<32x128xf32>, vector<8x128xf32> -> vector<8x128xf32>
      %27 = arith.addf %25, %26 : vector<8x128xf32>
      %28 = arith.negf %27 : vector<8x128xf32>
      %29 = math.exp %28 : vector<8x128xf32>
      %cst_31 = arith.constant 1.000000e+00 : f32
      %30 = vector.broadcast %cst_31 : f32 to vector<8x128xf32>
      %31 = arith.addf %30, %29 : vector<8x128xf32>
      %32 = arith.divf %30, %31 : vector<8x128xf32>
      %33 = math.tanh %27 : vector<8x128xf32>
      %34 = vector.extract_strided_slice %32 {offsets = [0, 0], sizes = [8, 32], strides = [1, 1]} : vector<8x128xf32> to vector<8x32xf32>
      %35 = vector.extract_strided_slice %32 {offsets = [0, 32], sizes = [8, 32], strides = [1, 1]} : vector<8x128xf32> to vector<8x32xf32>
      %36 = vector.extract_strided_slice %33 {offsets = [0, 64], sizes = [8, 32], strides = [1, 1]} : vector<8x128xf32> to vector<8x32xf32>
      %37 = vector.extract_strided_slice %32 {offsets = [0, 96], sizes = [8, 32], strides = [1, 1]} : vector<8x128xf32> to vector<8x32xf32>
      %38 = arith.mulf %35, %arg14 : vector<8x32xf32>
      %39 = arith.mulf %34, %36 : vector<8x32xf32>
      %40 = arith.addf %38, %39 : vector<8x32xf32>
      %41 = math.tanh %40 : vector<8x32xf32>
      %42 = arith.mulf %37, %41 : vector<8x32xf32>
      %cst_32 = arith.constant dense<0.000000e+00> : vector<8x128xf32>
      %43 = tpu.matmul %42, %2, %cst_32 {dimension_numbers = #tpu.dot_dimension_numbers<[1], [0], [0], [1], [0, 0, 1, 1], [], []>} : vector<8x32xf32>, vector<32x128xf32>, vector<8x128xf32> -> vector<8x128xf32>
      %cst_33 = arith.constant dense<0.000000e+00> : vector<8x128xf32>
      %44 = tpu.matmul %arg13, %4, %cst_33 {dimension_numbers = #tpu.dot_dimension_numbers<[1], [0], [0], [1], [0, 0, 1, 1], [], []>} : vector<8x32xf32>, vector<32x128xf32>, vector<8x128xf32> -> vector<8x128xf32>
      %45 = arith.addf %43, %44 : vector<8x128xf32>
      %46 = vector.broadcast %6 : vector<1x128xf32> to vector<8x128xf32>
      %47 = arith.addf %45, %46 : vector<8x128xf32>
      %48 = arith.negf %47 : vector<8x128xf32>
      %49 = math.exp %48 : vector<8x128xf32>
      %cst_34 = arith.constant 1.000000e+00 : f32
      %50 = vector.broadcast %cst_34 : f32 to vector<8x128xf32>
      %51 = arith.addf %50, %49 : vector<8x128xf32>
      %52 = arith.divf %50, %51 : vector<8x128xf32>
      %53 = math.tanh %47 : vector<8x128xf32>
      %54 = vector.extract_strided_slice %52 {offsets = [0, 0], sizes = [8, 32], strides = [1, 1]} : vector<8x128xf32> to vector<8x32xf32>
      %55 = vector.extract_strided_slice %52 {offsets = [0, 32], sizes = [8, 32], strides = [1, 1]} : vector<8x128xf32> to vector<8x32xf32>
      %56 = vector.extract_strided_slice %53 {offsets = [0, 64], sizes = [8, 32], strides = [1, 1]} : vector<8x128xf32> to vector<8x32xf32>
      %57 = vector.extract_strided_slice %52 {offsets = [0, 96], sizes = [8, 32], strides = [1, 1]} : vector<8x128xf32> to vector<8x32xf32>
      %58 = arith.mulf %55, %arg15 : vector<8x32xf32>
      %59 = arith.mulf %54, %56 : vector<8x32xf32>
      %60 = arith.addf %58, %59 : vector<8x32xf32>
      %61 = math.tanh %60 : vector<8x32xf32>
      %62 = arith.mulf %57, %61 : vector<8x32xf32>
      scf.yield %42, %62, %40, %60 : vector<8x32xf32>, vector<8x32xf32>, vector<8x32xf32>, vector<8x32xf32>
    }
    %c8_i32_21 = arith.constant 8 : i32
    %c0_22 = arith.constant 0 : index
    %c0_23 = arith.constant 0 : index
    %17 = vector.load %arg8[%c0_22, %c0_23] : memref<32x8xf32, #tpu.memory_space<vmem>>, vector<32x8xf32>
    %cst = arith.constant dense<0.000000e+00> : vector<8x8xf32>
    %18 = tpu.matmul %16#1, %17, %cst {dimension_numbers = #tpu.dot_dimension_numbers<[1], [0], [0], [1], [0, 0, 1, 1], [], []>} : vector<8x32xf32>, vector<32x8xf32>, vector<8x8xf32> -> vector<8x8xf32>
    %c0_24 = arith.constant 0 : index
    %c0_25 = arith.constant 0 : index
    %19 = vector.load %arg9[%c0_24, %c0_25] : memref<1x8xf32, #tpu.memory_space<vmem>>, vector<1x8xf32>
    %20 = vector.broadcast %19 : vector<1x8xf32> to vector<8x8xf32>
    %21 = arith.addf %18, %20 : vector<8x8xf32>
    %c0_26 = arith.constant 0 : index
    %c0_27 = arith.constant 0 : index
    %22 = vector.load %arg10[%c0_26, %c0_27] : memref<8x8xf32, #tpu.memory_space<vmem>>, vector<8x8xf32>
    tpu.vector_store %arg10[%c0_26, %c0_27], %21 {strides = array<i32>} : memref<8x8xf32, #tpu.memory_space<vmem>>, vector<8x8xf32>,
    return
  }
  func.func @transform_0(%arg0: i32) -> (i32, i32, i32) {
    %c0_i32 = arith.constant 0 : i32
    %c0_i32_0 = arith.constant 0 : i32
    %c0_i32_1 = arith.constant 0 : i32
    %c0_i32_2 = arith.constant 0 : i32
    return %c0_i32, %c0_i32_0, %c0_i32_1 : i32, i32, i32
  }
  func.func @transform_1(%arg0: i32) -> (i32, i32, i32) {
    %c0_i32 = arith.constant 0 : i32
    %c0_i32_0 = arith.constant 0 : i32
    %c0_i32_1 = arith.constant 0 : i32
    %c0_i32_2 = arith.constant 0 : i32
    return %c0_i32, %c0_i32_0, %c0_i32_1 : i32, i32, i32
  }
  func.func @transform_2(%arg0: i32) -> (i32, i32, i32) {
    %c0_i32 = arith.constant 0 : i32
    %c0_i32_0 = arith.constant 0 : i32
    %c0_i32_1 = arith.constant 0 : i32
    %c0_i32_2 = arith.constant 0 : i32
    return %c0_i32, %c0_i32_0, %c0_i32_1 : i32, i32, i32
  }
  func.func @transform_3(%arg0: i32) -> (i32, i32) {
    %c0_i32 = arith.constant 0 : i32
    %c0_i32_0 = arith.constant 0 : i32
    %c0_i32_1 = arith.constant 0 : i32
    return %c0_i32, %c0_i32_0 : i32, i32
  }
  func.func @transform_4(%arg0: i32) -> (i32, i32, i32) {
    %c0_i32 = arith.constant 0 : i32
    %c0_i32_0 = arith.constant 0 : i32
    %c0_i32_1 = arith.constant 0 : i32
    %c0_i32_2 = arith.constant 0 : i32
    return %c0_i32, %c0_i32_0, %c0_i32_1 : i32, i32, i32
  }
  func.func @transform_5(%arg0: i32) -> (i32, i32, i32) {
    %c0_i32 = arith.constant 0 : i32
    %c0_i32_0 = arith.constant 0 : i32
    %c0_i32_1 = arith.constant 0 : i32
    %c0_i32_2 = arith.constant 0 : i32
    return %c0_i32, %c0_i32_0, %c0_i32_1 : i32, i32, i32
  }
  func.func @transform_6(%arg0: i32) -> (i32, i32, i32) {
    %c0_i32 = arith.constant 0 : i32
    %c0_i32_0 = arith.constant 0 : i32
    %c0_i32_1 = arith.constant 0 : i32
    %c0_i32_2 = arith.constant 0 : i32
    return %c0_i32, %c0_i32_0, %c0_i32_1 : i32, i32, i32
  }
  func.func @transform_7(%arg0: i32) -> (i32, i32) {
    %c0_i32 = arith.constant 0 : i32
    %c0_i32_0 = arith.constant 0 : i32
    %c0_i32_1 = arith.constant 0 : i32
    return %c0_i32, %c0_i32_0 : i32, i32
  }
  func.func @transform_8(%arg0: i32) -> (i32, i32) {
    %c0_i32 = arith.constant 0 : i32
    %c0_i32_0 = arith.constant 0 : i32
    %c0_i32_1 = arith.constant 0 : i32
    return %c0_i32, %c0_i32_0 : i32, i32
  }
  func.func @transform_9(%arg0: i32) -> (i32, i32) {
    %c0_i32 = arith.constant 0 : i32
    %c0_i32_0 = arith.constant 0 : i32
    %c0_i32_1 = arith.constant 0 : i32
    return %c0_i32, %c0_i32_0 : i32, i32
  }
}

</mosaic_0001>

<bundles_post_ra>
// kernel: tpu_custom_call.1
= control target key start
LH: loop header
LB: loop body
LE: loop exit
PB: predicated region body
PF: predicated region fallthrough
CT: control target
= control target key end

     0   :  { %14 = vsyncpa [#allocation3], 0  ;;  %s1140_s0 = inlined_call_operand.hbm [shape: f32[8,8,128], index: 0, kind: input, shape index: {}]   ;;  %s1141_s1 = inlined_call_operand.vmem [shape: f32[2,8,32], index: 1, kind: input, shape index: {}]   ;;  %s1142_s2 = inlined_call_operand.hbm [shape: f32[2,8,32], index: 2, kind: input, shape index: {}]   ;;  %s1143_s3 = inlined_call_operand.vmem [shape: f32[32,128], index: 3, kind: input, shape index: {}]   ;;  %s1144_s4 = inlined_call_operand.hbm [shape: f32[1,32,128], index: 4, kind: input, shape index: {}]   ;;  %s1145_s5 = inlined_call_operand.hbm [shape: f32[1,32,128], index: 5, kind: input, shape index: {}]   ;;  %s1146_s6 = inlined_call_operand.vmem [shape: f32[1,1,128], index: 6, kind: input, shape index: {}]   ;;  %s1147_s7 = inlined_call_operand.vmem [shape: f32[32,8], index: 7, kind: input, shape index: {}]   ;;  %s1148_s8 = inlined_call_operand.vmem [shape: f32[1,8], index: 8, kind: input, shape index: {}]   ;;  %s1149_s9 = inlined_call_operand.hbm [shape: f32[8,8], index: 9, kind: output, shape index: {}]  }
   0x1   :  { %15 = vsyncpa [#allocation6], 0 }
   0x2   :  { %16 = vsyncpa [#allocation9], 0 }
   0x3   :  { %17 = vsyncpa [#allocation4], 0  ;;  %s870_s30 = smov [#allocation5]   ;;  %s871_s11 = smov [#allocation2]  }
   0x4   :  { %s37_s10 = sshll.u32 %s870_s30, 4  ;;  %s23_s12 = sshll.u32 %s871_s11, 4  ;;  %s38_s10 = int_to_ptr.vmem [resolvable:$true] %s37_s10  ;;  %s936_s12 = int_to_ptr.vmem [resolvable:$true] %s23_s12 }
   0x5   :  { %s712_s15 = scalar_lea.hbm %s1142_s2, 256 }
   0x6   :  { %p713_p0 = scmp.ne.s32.totalorder %s1142_s2, %s712_s15  ;;  %p716_p1 = scmp.lt.u32.totalorder %s712_s15, %s1142_s2 }
   0x8   :  { %p718_p2 = pnand %p716_p1, %p713_p0 }
   0xa   :  { %721 = shalt.err (!%p718_p2)
}
   0xb   :  { %s722_s20 = scalar_lea.vmem %s38_s10, 256  ;;  %p727_p4 = scmp.lt.s32.totalorder %s38_s10, %s38_s10 }
   0xc   :  { %p723_p3 = scmp.ne.s32.totalorder %s38_s10, %s722_s20  ;;  %p728_p5 = scmp.lt.s32.totalorder %s722_s20, %s722_s20 }
   0xe   :  { %p729_p6 = por %p728_p5, %p727_p4 }
  0x10   :  { %p730_p7 = pnand %p729_p6, %p723_p3 }
  0x12   :  { %733 = shalt.err (!%p730_p7)
}
  0x13   :  { %s872_s21 = smov 128   ;;  %s873_s22 = smov 8  }
  0x14   :  { %43 = dma.hbm_to_vmem [thread:$0]  %s1142_s2, 256, %s38_s10, [#allocation6], %s872_s21, %s872_s21, %s873_s22  }
  0x15   :  { %s734_s27 = scalar_lea.hbm %s1140_s0, 1024 }
  0x16   :  { %p735_p8 = scmp.ne.s32.totalorder %s1140_s0, %s734_s27  ;;  %p738_p9 = scmp.lt.u32.totalorder %s734_s27, %s1140_s0 }
  0x18   :  { %p740_p10 = pnand %p738_p9, %p735_p8 }
  0x1a   :  { %743 = shalt.err (!%p740_p10)
}
  0x1b   :  { %s744_s13 = scalar_lea.vmem %s936_s12, 1024  ;;  %p749_p12 = scmp.lt.s32.totalorder %s936_s12, %s936_s12 }
  0x1c   :  { %p745_p11 = scmp.ne.s32.totalorder %s936_s12, %s744_s13  ;;  %p750_p13 = scmp.lt.s32.totalorder %s744_s13, %s744_s13 }
  0x1e   :  { %p751_p0 = por %p750_p13, %p749_p12 }
  0x20   :  { %p752_p1 = pnand %p751_p0, %p745_p11 }
  0x22   :  { %755 = shalt.err (!%p752_p1)
}
  0x23   :  { %29 = dma.hbm_to_vmem [thread:$0]  %s1140_s0, 1024, %s936_s12, [#allocation3], %s872_s21, %s872_s21, %s873_s22  }
  0x24   :  { %s874_s14 = smov [#allocation7]   ;;  %s875_s16 = smov [#allocation8]  }
  0x25   :  { %s51_s15 = sshll.u32 %s874_s14, 4  ;;  %s63_s17 = sshll.u32 %s875_s16, 4  ;;  %s52_s15 = int_to_ptr.vmem [resolvable:$true] %s51_s15  ;;  %s973_s17 = int_to_ptr.vmem [resolvable:$true] %s63_s17 }
  0x26   :  { %s756_s20 = scalar_lea.hbm %s1144_s4, 512 }
  0x27   :  { %p757_p2 = scmp.ne.s32.totalorder %s1144_s4, %s756_s20  ;;  %p760_p3 = scmp.lt.u32.totalorder %s756_s20, %s1144_s4 }
  0x29   :  { %p762_p4 = pnand %p760_p3, %p757_p2 }
  0x2b   :  { %765 = shalt.err (!%p762_p4)
}
  0x2c   :  { %s766_s0 = scalar_lea.vmem %s52_s15, 512  ;;  %p771_p6 = scmp.lt.s32.totalorder %s52_s15, %s52_s15 }
  0x2d   :  { %p767_p5 = scmp.ne.s32.totalorder %s52_s15, %s766_s0  ;;  %p772_p7 = scmp.lt.s32.totalorder %s766_s0, %s766_s0 }
  0x2f   :  { %p773_p8 = por %p772_p7, %p771_p6 }
  0x31   :  { %p774_p9 = pnand %p773_p8, %p767_p5 }
  0x33   :  { %777 = shalt.err (!%p774_p9)
}
  0x34   :  { %57 = dma.hbm_to_vmem [thread:$0]  %s1144_s4, 512, %s52_s15, [#allocation6], %s872_s21, %s872_s21, %s873_s22  }
  0x35   :  { %s778_s30 = scalar_lea.hbm %s1145_s5, 512 }
  0x36   :  { %p779_p10 = scmp.ne.s32.totalorder %s1145_s5, %s778_s30  ;;  %p782_p11 = scmp.lt.u32.totalorder %s778_s30, %s1145_s5 }
  0x38   :  { %p784_p12 = pnand %p782_p11, %p779_p10 }
  0x3a   :  { %787 = shalt.err (!%p784_p12)
}
  0x3b   :  { %s788_s14 = scalar_lea.vmem %s973_s17, 512  ;;  %p793_p0 = scmp.lt.s32.totalorder %s973_s17, %s973_s17 }
  0x3c   :  { %p789_p13 = scmp.ne.s32.totalorder %s973_s17, %s788_s14  ;;  %p794_p1 = scmp.lt.s32.totalorder %s788_s14, %s788_s14 }
  0x3e   :  { %p795_p2 = por %p794_p1, %p793_p0 }
  0x40   :  { %p796_p3 = pnand %p795_p2, %p789_p13 }
  0x42   :  { %799 = shalt.err (!%p796_p3)
}
  0x43   :  { %69 = dma.hbm_to_vmem [thread:$0]  %s1145_s5, 512, %s973_s17, [#allocation9], %s872_s21, %s872_s21, %s873_s22  }
  0x44   :  { %842 = dma.done.wait [#allocation3], 1024  }
  0x45   :  { %843 = vsyncadd [#allocation3], 4294966272 }
  0x46   :  { %844 = dma.done.wait [#allocation6], 768  }
  0x47   :  { %845 = vsyncadd [#allocation6], 4294966528 }
  0x48   :  { %846 = dma.done.wait [#allocation9], 512  }
  0x49   :  { %847 = vsyncadd [#allocation9], 4294966784  ;;  %v1013_v0 = vld [vmem:[%s1143_s3] sm:$0xff]  ;;  %v1018_v1 = vld [vmem:[%s1143_s3 + $0x8] sm:$0xff] }
  0x4a   :  { %v1023_v2 = vld [vmem:[%s1143_s3 + $0x10] sm:$0xff]  ;;  %v1028_v3 = vld [vmem:[%s1143_s3 + $0x18] sm:$0xff]  ;;  %v1034_v6 = vld [vmem:[#allocation7 + $0x10] sm:$0xff] }
  0x4b   :  { %v1030_v4 = vld [vmem:[#allocation7] sm:$0xff]  ;;  %v1032_v5 = vld [vmem:[#allocation7 + $0x8] sm:$0xff]  ;;  %v1036_v7 = vld [vmem:[#allocation7 + $0x18] sm:$0xff] }
  0x4c   :  { %v1038_v8 = vld [vmem:[#allocation8] sm:$0xff]  ;;  %v1040_v9 = vld [vmem:[#allocation8 + $0x8] sm:$0xff]  ;;  %v1042_v10 = vld [vmem:[#allocation8 + $0x10] sm:$0xff] }
  0x4d   :  { %v1044_v11 = vld [vmem:[#allocation8 + $0x18] sm:$0xff]  ;;  %v1049_v12 = vld [vmem:[%s1146_s6] ss:$0 sm:$0xff]  ;;  %s1065_s6 = smov 0  }
  0x4e   :  { %v101_v13 = vld [vmem:[%s1141_s1] sm:$0xff]   ;;  %v542_v14 = vld [vmem:[%s1141_s1 + $0x8] sm:$0xff]  }
  0x4f   :  { %v104_v15 = vld [vmem:[#allocation5] sm:$0xff]   ;;  %v106_v16 = vld [vmem:[#allocation5 + $0x8] sm:$0xff]  }
  0x50 LB: > { %v617_v17 = vpack.c.bf16 %v1018_v1, %v1013_v0  ;;  %v876_v18 = vmov 0.0|0.0   ;;  %v620_v19 = vpack.c.bf16 %v1028_v3, %v1023_v2  ;;  %vm877_vm0 = vmmov 0   ;;  %s543_s1 = sshll.u32 %s868_s6, 3  ;;  %s879_s27 = smov 64   ;;  %s868_s6 = sphi %s1065_s6, %s112_s6   ;;  %v864_v13 = vphi %v101_v13, %v298_v13   ;;  %v860_v14 = vphi %v542_v14, %v1150_v14   ;;  %v856_v15 = vphi %v104_v15, %v413_v15   ;;  %v852_v16 = vphi %v106_v16, %v417_v16  }
  0x51   : > { %616 = vmatprep.subr.bf16.mxu0 %v876_v18  ;;  %622 = vmatprep.subr.bf16.mxu1 %v876_v18  ;;  %v878_v20 = vmov 0.0   ;;  %vm120_vm1 = vcmask 261120   ;;  %s118_s12 = scalar_lea.vmem [#allocation2], %s543_s1  ;;  %s880_s28 = smov 32   ;;  %v623_v36 = vpack.c.bf16 %v1040_v9, %v1038_v8  ;;  %v629_v37 = vpack.c.bf16 %v1032_v5, %v1030_v4 }
  0x52   : > { %618 = vmatpush3.bf16.msra.mxu0 %v617_v17  ;;  %580 = vmatprep.mubr.msk.f32.mxu0 %vm877_vm0, %v878_v20  ;;  %v119_v21 = vld [vmem:[%s118_s12] sm:$0xff]  ;;  %v626_v38 = vpack.c.bf16 %v1044_v11, %v1042_v10  ;;  %v632_v39 = vpack.c.bf16 %v1036_v7, %v1034_v6  ;;  %s881_s29 = smov 96   ;;  %s112_s6 = sadd.s32 1, %s868_s6  }
  0x53   : > { %619 = vmatprep.subr.bf16.mxu0 %v876_v18  ;;  %591 = vmatprep.mubr.msk.f32.mxu1 %vm877_vm0, %v878_v20  ;;  %p109_p4 = scmp.ge.s32.totalorder %s112_s6, 8  }
  0x54   : > { %624 = vmatpush3.bf16.msra.mxu1 %v623_v36  ;;  %v419_v17 = vld [vmem:[%s1147_s7] sm:$0xff] (%p109_p4)  ;;  %vm883_vm2 = vmmov (%p109_p4), 0   ;;  %v884_v0 = vmov (%p109_p4), 0.0   ;;  %s885_s19 = smov (%p109_p4), [#allocation10]   ;;  %vm504_vm3 = vcmask (%p109_p4), 64512  }
  0x55   : > { %625 = vmatprep.subr.bf16.mxu1 %v876_v18  ;;  %v550_v2 = vld [vmem:[%s1148_s8] ss:$0 sm:$0xff] (%p109_p4)  ;;  %s512_s20 = sshll.u32 (%p109_p4), %s885_s19, 4  ;;  %s513_s20 = int_to_ptr.vmem [resolvable:$true] %s512_s20 }
  0x56   : > { %621 = vmatpush3.bf16.msra.mxu0 %v620_v19  ;;  %v421_v19 = vld [vmem:[%s1147_s7 + $0x10] sm:$0xff] (%p109_p4)  ;;  %p805_p6 = scmp.lt.s32.totalorder (%p109_p4), %s513_s20, %s513_s20 }
  0x57   : > { %628 = vmatprep.subr.bf16.mxu0 %v876_v18 }
  0x58   : > { %627 = vmatpush3.bf16.msra.mxu1 %v626_v38 }
  0x59   : > { %581 = vmatmul.mubr.msk.f32.vlgmr.msra.gmra.mrb[0].mxu0 %vm120_vm1, %v864_v13 }
  0x5a   : > { %602 = vmatprep.mubr.msk.f32.mxu0 %vm877_vm0, %v878_v20  ;;  %630 = vmatpush3.bf16.msra.mxu0 %v629_v37  ;;  %v882_v20 = vmov (%p109_p4), 0.0|0.0  }
  0x5b   : > { %631 = vmatprep.subr.bf16.mxu0 %v876_v18  ;;  %592 = vmatmul.mubr.msk.f32.vlgmr.msra.gmra.mrb[0].mxu1 %vm120_vm1, %v860_v14  ;;  %v420_v18 = vld [vmem:[%s1147_s7 + $0x8] sm:$0xff] (%p109_p4) }
  0x5e   : > { %633 = vmatpush3.bf16.msra.mxu0 %v632_v39 }
  0x5f   :  { %634 = vmatprep.subr.bf16.mxu0 (%p109_p4), %v882_v20 }
 0x12c   : > { %v190_v22 = vpop.f32.mrb[0].mxu0 }
 0x12d   : > { %v194_v23 = vadd.f32 %v190_v22, %v119_v21  ;;  %v582_v24 = vpop.f32.mrb[1].mxu0  ;;  %v635_v21 = vpack.c.bf16 (%p109_p4), %v420_v18, %v419_v17 }
 0x12e   : > { %v292_v43 = vpop.f32.mrb[0].mxu1 }
 0x12f   : > { %696 = vtanh.f32 %v194_v23  ;;  %v545_v26 = vmul.f32 -1.442695, %v194_v23  ;;  %v593_v44 = vpop.f32.mrb[1].mxu1 }
 0x131   : > { %698 = vpow2.f32 %v545_v26 }
 0x139   : > { %v697_v25 = vpop.eup %696 }
 0x13a   : > { %208 = vrot.lane.b32.xlu0 %v697_v25, %s879_s27 }
 0x13b   : > { %v699_v27 = vpop.eup %698 }
 0x13c   : > { %v198_v28 = vadd.f32 1.0, %v699_v27 }
 0x13e   : > { %203 = vrot.lane.b32.xlu0 %v856_v15, %s880_s28  ;;  %700 = vrcp.f32 %v198_v28 }
 0x148   : > { %v701_v29 = vpop.eup %700 }
 0x1ac   : > { %v209_v30 = vpop.permute.xlu0 %208 }
 0x1ad   : > { %v211_v31 = vmul.f32 %v701_v29, %v209_v30 }
 0x1af   : > { %213 = vrot.lane.b32.xlu1 %v211_v31, %s880_s28 }
 0x1b0   : > { %v204_v32 = vpop.permute.xlu0 %203 }
 0x1b1   : > { %v206_v33 = vmul.f32 %v701_v29, %v204_v32 }
 0x221   : > { %v214_v34 = vpop.permute.xlu1 %213 }
 0x222   : > { %v216_v35 = vadd.f32 %v214_v34, %v206_v33 }
 0x224   : > { %702 = vtanh.f32 %v216_v35 }
 0x22e   : > { %v703_v40 = vpop.eup %702 }
 0x22f   : > { %219 = vrot.lane.b32.xlu1 %v703_v40, %s879_s27 }
 0x2a1   : > { %v220_v41 = vpop.permute.xlu1 %219 }
 0x2a2   : > { %v222_v42 = vmul.f32 %v701_v29, %v220_v41 }
 0x2a4   : > { %297 = vrot.lane.b32.xlu0 %v222_v42, %s880_s28 }
 0x2a8   : > { %386 = vrot.lane.b32.xlu0 %v852_v16, %s880_s28 }
 0x316   : > { %v298_v13 = vpop.permute.xlu0 %297  }
 0x317   : > { %603 = vmatmul.mubr.msk.f32.vlgmr.msra.gmra.mrb[2].mxu0 %vm120_vm1, %v298_v13  ;;  %v422_v13 = vld [vmem:[%s1147_s7 + $0x18] sm:$0xff] (%p109_p4)  ;;  %s800_s7 = scalar_lea.vmem (%p109_p4), %s513_s20, 128 }
 0x318   :  { %613 = vmatprep.mubr.msk.f32.mxu0 (%p109_p4), %vm883_vm2, %v884_v0  ;;  %636 = vmatpush3.bf16.msra.mxu0 (%p109_p4), %v635_v21  ;;  %v638_v1 = vpack.c.bf16 (%p109_p4), %v422_v13, %v421_v19  ;;  %p801_p5 = scmp.ne.s32.totalorder (%p109_p4), %s513_s20, %s800_s7  ;;  %p806_p7 = scmp.lt.s32.totalorder (%p109_p4), %s800_s7, %s800_s7 }
 0x319   :  { %637 = vmatprep.subr.bf16.mxu0 (%p109_p4), %v882_v20 }
 0x31a   : > { %v387_v56 = vpop.permute.xlu0 %386  ;;  %p807_p8 = por (%p109_p4), %p806_p7, %p805_p6 }
 0x31c   :  { %639 = vmatpush3.bf16.msra.mxu0 (%p109_p4), %v638_v1  ;;  %p808_p9 = pnand (%p109_p4), %p807_p8, %p801_p5 }
 0x3ea   : > { %v367_v45 = vpop.f32.mrb[2].mxu0 }
 0x3eb   : > { %v368_v46 = vadd.f32 %v367_v45, %v292_v43  ;;  %v604_v47 = vpop.f32.mrb[3].mxu0 }
 0x3ed   : > { %v377_v48 = vadd.f32 %v1049_v12, %v368_v46 }
 0x3ef   : > { %704 = vtanh.f32 %v377_v48  ;;  %v549_v50 = vmul.f32 -1.442695, %v377_v48 }
 0x3f1   : > { %706 = vpow2.f32 %v549_v50 }
 0x3f9   : > { %v705_v49 = vpop.eup %704 }
 0x3fa   : > { %391 = vrot.lane.b32.xlu1 %v705_v49, %s879_s27 }
 0x3fb   : > { %v707_v51 = vpop.eup %706 }
 0x3fc   : > { %v381_v52 = vadd.f32 1.0, %v707_v51 }
 0x3fe   : > { %708 = vrcp.f32 %v381_v52 }
 0x408   : > { %v709_v53 = vpop.eup %708 }
 0x409   : > { %v389_v57 = vmul.f32 %v709_v53, %v387_v56 }
 0x46c   : > { %v392_v54 = vpop.permute.xlu1 %391 }
 0x46d   : > { %v394_v55 = vmul.f32 %v709_v53, %v392_v54 }
 0x46f   : > { %396 = vrot.lane.b32.xlu1 %v394_v55, %s880_s28 }
 0x4e1   : > { %v397_v58 = vpop.permute.xlu1 %396 }
 0x4e2   : > { %v399_v59 = vadd.f32 %v397_v58, %v389_v57 }
 0x4e4   : > { %710 = vtanh.f32 %v399_v59 }
 0x4ee   : > { %v711_v60 = vpop.eup %710 }
 0x4ef   : > { %402 = vrot.lane.b32.xlu0 %v711_v60, %s879_s27 }
 0x4f3   : > { %412 = vrot.lane.b32.xlu0 %v216_v35, %s881_s29 }
 0x561   : > { %v403_v61 = vpop.permute.xlu0 %402 }
 0x562   : > { %v405_v62 = vmul.f32 %v709_v53, %v403_v61 }
 0x564   : > { %408 = vrot.lane.b32.xlu1 %v405_v62, %s880_s28 }
 0x565   : > { %v413_v15 = vpop.permute.xlu0 %412  }
 0x568   : > { %416 = vrot.lane.b32.xlu1 %v399_v59, %s881_s29 }
 0x5d4   :  { %111 = sbr.rel (!%p109_p4) target bundleno = 80 (0x50), region = 82 }
 0x5d6   : > { %v409_v63 = vpop.permute.xlu1 %408  }
 0x5d7   : > { %v1150_v14 = vmov %v409_v63  ;;  %614 = vmatmul.mubr.msk.f32.vlgmr.msra.gmra.mrb[0].mxu0 (%p109_p4), %vm120_vm1, %v409_v63 }
 0x5da   : > { %v417_v16 = vpop.permute.xlu1 %416  }
 0x6aa   :  { %v500_v3 = vpop.f32.mrb[0].mxu0 }
 0x6ab   :  { %v501_v4 = vadd.f32 %v550_v2, %v500_v3  ;;  %v615_v5 = vpop.f32.mrb[1].mxu0 }
 0x6ad   :  { %505 = vst.msk [vmem:[#allocation10] sm:$0xff] %vm504_vm3, %v501_v4 }
 0x6ae   :  { %811 = shalt.err (!%p808_p9)
}
 0x6af   :  { %s812_s5 = scalar_lea.hbm %s1149_s9, 128 }
 0x6b0   :  { %p813_p10 = scmp.ne.s32.totalorder %s1149_s9, %s812_s5  ;;  %p816_p11 = scmp.lt.u32.totalorder %s812_s5, %s1149_s9 }
 0x6b2   :  { %p818_p12 = pnand %p816_p11, %p813_p10 }
 0x6b4   :  { %821 = shalt.err (!%p818_p12)
}
 0x6b5   :  { %515 = dma.vmem_to_hbm [thread:$0]  %s513_s20, 128, %s1149_s9, [#allocation4]  }
 0x6b6   :  { %848 = dma.done.wait [#allocation4], 128  }
 0x6b7   :  { %849 = vsyncadd [#allocation4], 4294967168 }
 0x6b8   :  { %519 = vsyncpa [#allocation3], 1 }
 0x6b9   :  { %520 = vsyncpa [#allocation6], 1 }
 0x6ba   :  { %521 = vsyncpa [#allocation9], 1 }
 0x6bb   :  { %522 = vsyncpa [#allocation4], 1 }

</bundles_post_ra>
